<compile_context>
chip_gen: v7x
topology: tpu7x:2x2x1
jax: 0.10.0
libtpu: 0.0.40
codegen_flags: <defaults>
</compile_context>

<pallas_src>
import jax
import jax.numpy as jnp
from jax.experimental import pallas as pl
from jax.experimental.pallas import tpu as pltpu


def _discriminator_kernel(x_ref, w1_ref, b1_ref, w2_ref, b2_ref, o_ref):
    # x_ref:  (TILE_B, F)     per-tile activations
    # w1_ref: (F, 128), b1_ref: (1, 128)   -- resident in VMEM across the grid
    # w2_ref: (8, 128) zero-padded (only row 0 is the real 128->1 weight)
    # b2_ref: (1, 1)
    # o_ref:  (1, TILE_B)     batch on the lane axis (lane-dense store)
    x = x_ref[...]                                                    # (TILE_B, F)
    h = jnp.dot(x, w1_ref[...],
                preferred_element_type=jnp.float32) + b1_ref[...]     # (TILE_B, 128)
    h = jnp.where(h > 0, h, jnp.float32(0.01) * h)                    # LeakyReLU(0.01)

    # Second projection, transposed so the batch dim lands on lanes:
    # (8, 128) contract (TILE_B, 128) over dim 1  ->  (8, TILE_B)  [A @ B^T form]
    zt = jax.lax.dot_general(
        w2_ref[...], h,
        dimension_numbers=(((1,), (1,)), ((), ())),
        preferred_element_type=jnp.float32)
    z = zt[0:1, :] + b2_ref[...]                                      # (1, TILE_B)

    # Sigmoid via EUP exp + approximate EUP reciprocal (free slots here).
    o_ref[...] = pl.reciprocal(1.0 + jnp.exp(-z), approx=True)


def discriminator_forward(x, w1, b1, w2, b2, *, tile_b=256):
    """x: (B, in_features) f32; w1: (F, 128); b1: (1, 128); w2: (128, 1); b2: (1, 1).
    Returns (B, 1) f32 probabilities in [0, 1]."""
    B, F = x.shape
    H = w1.shape[1]                      # 128

    # Choose a batch tile: multiple of 128 (lane-dense transposed output).
    if B < tile_b:
        tile_b = max(128, ((B + 127) // 128) * 128)
    b_pad = ((B + tile_b - 1) // tile_b) * tile_b
    if b_pad != B:
        x = jnp.pad(x, ((0, b_pad - B), (0, 0)))

    # Pack the 128->1 weight as an (8, 128) tile (rows 1..7 zero) so the second
    # projection is a clean MXU A @ B^T with a lane-dense (1, TILE_B) result.
    w2p = jnp.zeros((8, H), dtype=x.dtype).at[0, :].set(w2[:, 0])

    grid = (b_pad // tile_b,)

    out_t = pl.pallas_call(
        _discriminator_kernel,
        out_shape=jax.ShapeDtypeStruct((1, b_pad), jnp.float32),
        grid=grid,
        in_specs=[
            pl.BlockSpec((tile_b, F), lambda i: (i, 0)),   # x: tiled over batch
            pl.BlockSpec((F, H), lambda i: (0, 0)),        # w1: resident
            pl.BlockSpec((1, H), lambda i: (0, 0)),        # b1: resident
            pl.BlockSpec((8, H), lambda i: (0, 0)),        # w2 (padded): resident
            pl.BlockSpec((1, 1), lambda i: (0, 0)),        # b2: resident
        ],
        out_specs=pl.BlockSpec((1, tile_b), lambda i: (0, i)),
        compiler_params=pltpu.CompilerParams(
            dimension_semantics=("parallel",),             # megacore on v7x
            vmem_limit_bytes=48 * 1024 * 1024,             # headroom under v7x 64 MiB
        ),
    )(x, w1, b1, w2p, b2)

    # (1, b_pad) -> (b_pad, 1) is a pure reshape (same contiguous order).
    return out_t.reshape(b_pad, 1)[:B]


def init_discriminator_params(key, in_features, hidden=128):
    """Deterministic init mimicking torch.nn.Linear default (U(-1/sqrt(fan_in), +))."""
    k1, k2, k3, k4 = jax.random.split(key, 4)
    bound1 = 1.0 / jnp.sqrt(jnp.float32(in_features))
    bound2 = 1.0 / jnp.sqrt(jnp.float32(hidden))
    # stored as (in, out) so the kernel computes x @ W + b
    w1 = jax.random.uniform(k1, (in_features, hidden), jnp.float32, -bound1, bound1)
    b1 = jax.random.uniform(k2, (1, hidden), jnp.float32, -bound1, bound1)
    w2 = jax.random.uniform(k3, (hidden, 1), jnp.float32, -bound2, bound2)
    b2 = jax.random.uniform(k4, (1, 1), jnp.float32, -bound2, bound2)
    return w1, b1, w2, b2


if __name__ == "__main__":
    key = jax.random.PRNGKey(0)
    kx, kp = jax.random.split(key)

    batch = 16
    in_features = 64   # e.g. a flattened 8x8 image fed to the discriminator

    x = jax.random.normal(kx, (batch, in_features), jnp.float32)
    w1, b1, w2, b2 = init_discriminator_params(kp, in_features)

    out = discriminator_forward(x, w1, b1, w2, b2)
    out = jax.block_until_ready(out)

    # Cross-check against a plain-JAX reference of the same math.
    h_ref = x @ w1 + b1
    h_ref = jnp.where(h_ref > 0, h_ref, 0.01 * h_ref)
    ref = jax.nn.sigmoid(h_ref @ w2 + b2)
    assert out.shape == (batch, 1)
    # Tolerance covers the approximate EUP reciprocal used for the sigmoid.
    assert jnp.allclose(out, ref, atol=5e-3, rtol=0), float(jnp.max(jnp.abs(out - ref)))

    print("KERNEL_OK")
</pallas_src>

<mosaic_0001>
module attributes {stable_mosaic.version = 11 : i64} {
  func.func @_discriminator_kernel(%arg0: i32, %arg1: memref<128x64xf32, #tpu.memory_space<vmem>>, %arg2: memref<64x128xf32, #tpu.memory_space<vmem>>, %arg3: memref<1x128xf32, #tpu.memory_space<vmem>>, %arg4: memref<8x128xf32, #tpu.memory_space<vmem>>, %arg5: memref<1x1xf32, #tpu.memory_space<vmem>>, %arg6: memref<1x128xf32, #tpu.memory_space<vmem>>) attributes {dimension_semantics = [#tpu.dimension_semantics<parallel>], iteration_bounds = array<i64: 1>, scalar_prefetch = 0 : i64, scratch_operands = 0 : i64, tpu.core_type = #tpu.core_type<tc>, window_params = [{transform_indices = @transform_0, window_bounds = array<i64: 128, 64>}, {pipeline_mode = #tpu.pipeline_mode<synchronous>, transform_indices = @transform_1, window_bounds = array<i64: 64, 128>}, {pipeline_mode = #tpu.pipeline_mode<synchronous>, transform_indices = @transform_2, window_bounds = array<i64: 1, 128>}, {pipeline_mode = #tpu.pipeline_mode<synchronous>, transform_indices = @transform_3, window_bounds = array<i64: 8, 128>}, {pipeline_mode = #tpu.pipeline_mode<synchronous>, transform_indices = @transform_4, window_bounds = array<i64: 1, 1>}, {transform_indices = @transform_5, window_bounds = array<i64: 1, 128>}]} {
    %c0 = arith.constant 0 : index
    %c0_0 = arith.constant 0 : index
    %0 = vector.load %arg1[%c0, %c0_0] : memref<128x64xf32, #tpu.memory_space<vmem>>, vector<128x64xf32>
    %c0_1 = arith.constant 0 : index
    %c0_2 = arith.constant 0 : index
    %1 = vector.load %arg2[%c0_1, %c0_2] : memref<64x128xf32, #tpu.memory_space<vmem>>, vector<64x128xf32>
    %cst = arith.constant dense<0.000000e+00> : vector<128x128xf32>
    %2 = tpu.matmul %0, %1, %cst {dimension_numbers = #tpu.dot_dimension_numbers<[1], [0], [0], [1], [0, 0, 1, 1], [], []>} : vector<128x64xf32>, vector<64x128xf32>, vector<128x128xf32> -> vector<128x128xf32>
    %c0_3 = arith.constant 0 : index
    %c0_4 = arith.constant 0 : index
    %3 = vector.load %arg3[%c0_3, %c0_4] : memref<1x128xf32, #tpu.memory_space<vmem>>, vector<1x128xf32>
    %4 = vector.broadcast %3 : vector<1x128xf32> to vector<128x128xf32>
    %5 = arith.addf %2, %4 : vector<128x128xf32>
    %cst_5 = arith.constant 0.000000e+00 : f32
    %6 = vector.broadcast %cst_5 : f32 to vector<128x128xf32>
    %7 = arith.cmpf ogt, %5, %6 : vector<128x128xf32>
    %cst_6 = arith.constant 0.00999999977 : f32
    %8 = vector.broadcast %cst_6 : f32 to vector<128x128xf32>
    %9 = arith.mulf %8, %5 : vector<128x128xf32>
    %10 = arith.select %7, %5, %9 : vector<128x128xi1>, vector<128x128xf32>
    %c0_7 = arith.constant 0 : index
    %c0_8 = arith.constant 0 : index
    %11 = vector.load %arg4[%c0_7, %c0_8] : memref<8x128xf32, #tpu.memory_space<vmem>>, vector<8x128xf32>
    %cst_9 = arith.constant dense<0.000000e+00> : vector<8x128xf32>
    %12 = tpu.matmul %11, %10, %cst_9 {dimension_numbers = #tpu.dot_dimension_numbers<[1], [1], [0], [0], [0, 0, 1, 0], [], []>} : vector<8x128xf32>, vector<128x128xf32>, vector<8x128xf32> -> vector<8x128xf32>
    %13 = vector.extract_strided_slice %12 {offsets = [0, 0], sizes = [1, 128], strides = [1, 1]} : vector<8x128xf32> to vector<1x128xf32>
    %c0_10 = arith.constant 0 : index
    %c0_11 = arith.constant 0 : index
    %14 = vector.load %arg5[%c0_10, %c0_11] : memref<1x1xf32, #tpu.memory_space<vmem>>, vector<1x1xf32>
    %15 = vector.broadcast %14 : vector<1x1xf32> to vector<1x128xf32>
    %16 = arith.addf %13, %15 : vector<1x128xf32>
    %cst_12 = arith.constant 0.000000e+00 : f32
    %17 = vector.broadcast %cst_12 : f32 to vector<1x128xf32>
    %18 = arith.subf %17, %16 : vector<1x128xf32>
    %19 = math.exp %18 : vector<1x128xf32>
    %cst_13 = arith.constant 1.000000e+00 : f32
    %20 = vector.broadcast %cst_13 : f32 to vector<1x128xf32>
    %21 = arith.addf %20, %19 : vector<1x128xf32>
    %22 = tpu.reciprocal %21 {approx = true} : vector<1x128xf32> -> vector<1x128xf32>
    %c0_14 = arith.constant 0 : index
    %c0_15 = arith.constant 0 : index
    %23 = vector.load %arg6[%c0_14, %c0_15] : memref<1x128xf32, #tpu.memory_space<vmem>>, vector<1x128xf32>
    tpu.vector_store %arg6[%c0_14, %c0_15], %22 {strides = array<i32>} : memref<1x128xf32, #tpu.memory_space<vmem>>, vector<1x128xf32>,
    return
  }
  func.func @transform_0(%arg0: i32) -> (i32, i32) {
    %c0_i32 = arith.constant 0 : i32
    %c0_i32_0 = arith.constant 0 : i32
    return %arg0, %c0_i32 : i32, i32
  }
  func.func @transform_1(%arg0: i32) -> (i32, i32) {
    %c0_i32 = arith.constant 0 : i32
    %c0_i32_0 = arith.constant 0 : i32
    %c0_i32_1 = arith.constant 0 : i32
    return %c0_i32, %c0_i32_0 : i32, i32
  }
  func.func @transform_2(%arg0: i32) -> (i32, i32) {
    %c0_i32 = arith.constant 0 : i32
    %c0_i32_0 = arith.constant 0 : i32
    %c0_i32_1 = arith.constant 0 : i32
    return %c0_i32, %c0_i32_0 : i32, i32
  }
  func.func @transform_3(%arg0: i32) -> (i32, i32) {
    %c0_i32 = arith.constant 0 : i32
    %c0_i32_0 = arith.constant 0 : i32
    %c0_i32_1 = arith.constant 0 : i32
    return %c0_i32, %c0_i32_0 : i32, i32
  }
  func.func @transform_4(%arg0: i32) -> (i32, i32) {
    %c0_i32 = arith.constant 0 : i32
    %c0_i32_0 = arith.constant 0 : i32
    %c0_i32_1 = arith.constant 0 : i32
    return %c0_i32, %c0_i32_0 : i32, i32
  }
  func.func @transform_5(%arg0: i32) -> (i32, i32) {
    %c0_i32 = arith.constant 0 : i32
    %c0_i32_0 = arith.constant 0 : i32
    return %c0_i32, %arg0 : i32, i32
  }
}

</mosaic_0001>

<bundles_post_ra>
// kernel: tpu_custom_call.1
= control target key start
LH: loop header
LB: loop body
LE: loop exit
PB: predicated region body
PF: predicated region fallthrough
CT: control target
= control target key end

     0   :  { %s775_s0 = inlined_call_operand.vmem [shape: f32[128,64], index: 0, kind: input, shape index: {}]   ;;  %s776_s1 = inlined_call_operand.vmem [shape: f32[64,128], index: 1, kind: input, shape index: {}]   ;;  %s777_s2 = inlined_call_operand.vmem [shape: f32[1,128], index: 2, kind: input, shape index: {}]   ;;  %s778_s3 = inlined_call_operand.vmem [shape: f32[8,128], index: 3, kind: input, shape index: {}]   ;;  %s779_s4 = inlined_call_operand.<no memory space> [shape: f32[1,1], index: 4, kind: input, shape index: {}]   ;;  %s780_s5 = inlined_call_operand.hbm [shape: f32[1,128], index: 5, kind: output, shape index: {}]  }
   0x1   :  { %v10_v0 = vstv %s779_s4 }
   0x2   :  { %11 = vst [vmem:[#allocation2] sm:$0x1] %v10_v0 }
   0x3   :  { %v39_v1 = vld [vmem:[%s776_s1] sm:$0xff]  ;;  %v40_v2 = vld [vmem:[%s776_s1 + $0x8] sm:$0xff]  ;;  %v41_v3 = vld [vmem:[%s776_s1 + $0x10] sm:$0xff]  ;;  %vm54_vm0 = vcmask 523264  }
   0x4   :  { %v531_v4 = vpack.c.bf16 %v40_v2, %v39_v1  ;;  %v42_v5 = vld [vmem:[%s776_s1 + $0x18] sm:$0xff]  ;;  %v43_v7 = vld [vmem:[%s776_s1 + $0x20] sm:$0xff]  ;;  %v44_v8 = vld [vmem:[%s776_s1 + $0x28] sm:$0xff] }
   0x5   :  { %v535_v6 = vpack.c.bf16 %v42_v5, %v41_v3  ;;  %v23_v9 = vld [vmem:[%s775_s0] sm:$0xff]  ;;  %v539_v10 = vpack.c.bf16 %v44_v8, %v43_v7  ;;  %v45_v11 = vld [vmem:[%s776_s1 + $0x30] sm:$0xff]  ;;  %v46_v12 = vld [vmem:[%s776_s1 + $0x38] sm:$0xff] }
   0x6   :  { %532 = vmatprep.subr.bf16.mxu0 %v531_v4  ;;  %472 = vmatprep.mubr.msk.f32.mxu0 %vm54_vm0, %v23_v9 }
   0x7   :  { %534 = vmatpush3.bf16.msra.mxu0 %v531_v4 }
   0x8   :  { %536 = vmatprep.subr.bf16.mxu0 %v535_v6 }
   0xb   :  { %538 = vmatpush3.bf16.msra.mxu0 %v535_v6 }
   0xc   :  { %12 = vsyncpa [#allocation4], 0  ;;  %540 = vmatprep.subr.bf16.mxu0 %v539_v10  ;;  %v543_v13 = vpack.c.bf16 %v46_v12, %v45_v11  ;;  %v24_v14 = vld [vmem:[%s775_s0 + $0x8] sm:$0xff]  ;;  %v25_v15 = vld [vmem:[%s775_s0 + $0x10] sm:$0xff]  ;;  %v605_v29 = vmov 0.0|0.0   ;;  %vm606_vm1 = vmmov 0  }
   0xd   :  { %v26_v16 = vld [vmem:[%s775_s0 + $0x18] sm:$0xff]  ;;  %v27_v17 = vld [vmem:[%s775_s0 + $0x20] sm:$0xff]  ;;  %v28_v18 = vld [vmem:[%s775_s0 + $0x28] sm:$0xff]  ;;  %547 = vmatprep.subr.bf16.mxu1 %v605_v29  ;;  %v607_v30 = vmov 0.0   ;;  %v608_v32 = vmov 0   ;;  %s609_s16 = smov [#allocation3]  }
   0xe   :  { %v29_v19 = vld [vmem:[%s775_s0 + $0x30] sm:$0xff]  ;;  %v30_v20 = vld [vmem:[%s775_s0 + $0x38] sm:$0xff]  ;;  %v31_v21 = vld [vmem:[%s775_s0 + $0x40] sm:$0xff]  ;;  %528 = vmatprep.mubr.msk.f32.mxu1 %vm606_vm1, %v607_v30  ;;  %576 = vset.pattern.permute.xlu0 %v608_v32  ;;  %s390_s17 = sshll.u32 %s609_s16, 4  ;;  %s391_s17 = int_to_ptr.vmem [resolvable:$true] %s390_s17 }
   0xf   :  { %542 = vmatpush3.bf16.msra.mxu0 %v539_v10  ;;  %v32_v22 = vld [vmem:[%s775_s0 + $0x48] sm:$0xff]  ;;  %v33_v23 = vld [vmem:[%s775_s0 + $0x50] sm:$0xff]  ;;  %v34_v24 = vld [vmem:[%s775_s0 + $0x58] sm:$0xff]  ;;  %s585_s18 = scalar_lea.vmem %s391_s17, 32  ;;  %p586_p1 = scmp.lt.s32.totalorder %s391_s17, %s391_s17 }
  0x10   :  { %544 = vmatprep.subr.bf16.mxu0 %v543_v13  ;;  %v35_v25 = vld [vmem:[%s775_s0 + $0x60] sm:$0xff]  ;;  %v36_v26 = vld [vmem:[%s775_s0 + $0x68] sm:$0xff]  ;;  %v37_v27 = vld [vmem:[%s775_s0 + $0x70] sm:$0xff] }
  0x11   :  { %v38_v28 = vld [vmem:[%s775_s0 + $0x78] sm:$0xff]  ;;  %v367_v31 = vld [vmem:[#allocation2] sm:$0x1] }
  0x12   :  { %370 = vperm.xlu0 %576, %v367_v31   ;;  %v735_v33 = vld [vmem:[%s777_s2] ss:$0 sm:$0xff] }
  0x13   :  { %546 = vmatpush3.bf16.msra.mxu0 %v543_v13 }
  0x16   :  { %473 = vmatmul.mubr.msk.f32.vlgmr.msra.gmra.mrb[0].mxu0 %vm54_vm0, %v24_v14 }
  0x17   :  { %475 = vmatprep.mubr.msk.f32.mxu0 %vm54_vm0, %v25_v15 }
  0x1a   :  { %476 = vmatmul.mubr.msk.f32.gmra.mrb[2].mxu0 %vm54_vm0, %v26_v16 }
  0x1b   :  { %478 = vmatprep.mubr.msk.f32.mxu0 %vm54_vm0, %v27_v17 }
  0x1e   :  { %479 = vmatmul.mubr.msk.f32.gmra.mrb[4].mxu0 %vm54_vm0, %v28_v18 }
  0x1f   :  { %481 = vmatprep.mubr.msk.f32.mxu0 %vm54_vm0, %v29_v19 }
  0x22   :  { %482 = vmatmul.mubr.msk.f32.gmra.mrb[6].mxu0 %vm54_vm0, %v30_v20 }
  0x23   :  { %484 = vmatprep.mubr.msk.f32.mxu0 %vm54_vm0, %v31_v21 }
  0x26   :  { %485 = vmatmul.mubr.msk.f32.gmra.mrb[8].mxu0 %vm54_vm0, %v32_v22 }
  0x27   :  { %487 = vmatprep.mubr.msk.f32.mxu0 %vm54_vm0, %v33_v23 }
  0x2a   :  { %488 = vmatmul.mubr.msk.f32.gmra.mrb[10].mxu0 %vm54_vm0, %v34_v24 }
  0x2b   :  { %490 = vmatprep.mubr.msk.f32.mxu0 %vm54_vm0, %v35_v25 }
  0x2e   :  { %491 = vmatmul.mubr.msk.f32.gmra.mrb[12].mxu0 %vm54_vm0, %v36_v26 }
  0x2f   :  { %493 = vmatprep.mubr.msk.f32.mxu0 %vm54_vm0, %v37_v27 }
  0x32   :  { %494 = vmatmul.mubr.msk.f32.gmra.mrb[14].mxu0 %vm54_vm0, %v38_v28 }
  0xe9   :  { %v474_v34 = vpop.f32.mrb[0].mxu0 }
  0xea   :  { %v175_v35 = vadd.f32 %v474_v34, %v735_v33  ;;  %v169_v36 = vpop.f32.mrb[1].mxu0 }
  0xeb   :  { %v170_v37 = vadd.f32 %v735_v33, %v169_v36 }
  0xec   :  { %v265_v38 = vmul.f32 0.01, %v175_v35  ;;  %vm249_vm2 = vcmp.gt.f32.partialorder %v175_v35, 0.0 }
  0xed   :  { %v264_v39 = vmul.f32 0.01, %v170_v37  ;;  %v477_v40 = vpop.f32.mrb[2].mxu0  ;;  %vm248_vm3 = vcmp.gt.f32.partialorder %v170_v37, 0.0 }
  0xee   :  { %v185_v41 = vadd.f32 %v477_v40, %v735_v33  ;;  %v179_v42 = vpop.f32.mrb[3].mxu0  ;;  %v281_v43 = vsel %vm249_vm2, %v175_v35, %v265_v38 }
  0xef   :  { %v180_v44 = vadd.f32 %v735_v33, %v179_v42  ;;  %v280_v45 = vsel %vm248_vm3, %v170_v37, %v264_v39 }
  0xf0   :  { %vm251_vm4 = vcmp.gt.f32.partialorder %v185_v41, 0.0  ;;  %v267_v46 = vmul.f32 0.01, %v185_v41  ;;  %v548_v47 = vpack.c.bf16 %v281_v43, %v280_v45 }
  0xf1   :  { %vm250_vm5 = vcmp.gt.f32.partialorder %v180_v44, 0.0  ;;  %v266_v48 = vmul.f32 0.01, %v180_v44  ;;  %v480_v49 = vpop.f32.mrb[4].mxu0 }
  0xf2   :  { %549 = vmatpush3.bf16.xpose.msra.mxu1 %v548_v47  ;;  %v195_v50 = vadd.f32 %v480_v49, %v735_v33  ;;  %v189_v51 = vpop.f32.mrb[5].mxu0  ;;  %v283_v52 = vsel %vm251_vm4, %v185_v41, %v267_v46  ;;  %v371_v47 = vpop.permute.xlu0 %370 }
  0xf3   :  { %v190_v53 = vadd.f32 %v735_v33, %v189_v51  ;;  %550 = vmatprep.subr.bf16.mxu1 %v605_v29  ;;  %v282_v54 = vsel %vm250_vm5, %v180_v44, %v266_v48  ;;  %v373_v44 = vlaneseq }
  0xf4   :  { %vm253_vm6 = vcmp.gt.f32.partialorder %v195_v50, 0.0  ;;  %v269_v55 = vmul.f32 0.01, %v195_v50  ;;  %v551_v56 = vpack.c.bf16 %v283_v52, %v282_v54 }
  0xf5   :  { %vm252_vm7 = vcmp.gt.f32.partialorder %v190_v53, 0.0  ;;  %v268_v57 = vmul.f32 0.01, %v190_v53  ;;  %v483_v58 = vpop.f32.mrb[6].mxu0  ;;  %v374_v45 = vshrl.u32 %v373_v44, 7 }
  0xf6   :  { %v205_v59 = vadd.f32 %v483_v58, %v735_v33  ;;  %v199_v60 = vpop.f32.mrb[7].mxu0  ;;  %v285_v61 = vsel %vm253_vm6, %v195_v50, %v269_v55 }
  0xf7   :  { %v200_v62 = vadd.f32 %v735_v33, %v199_v60  ;;  %v284_v63 = vsel %vm252_vm7, %v190_v53, %v268_v57  ;;  %v375_v46 = vsub.s32 0, %v374_v45 }
  0xf8   :  { %vm255_vm8 = vcmp.gt.f32.partialorder %v205_v59, 0.0  ;;  %v271_v0 = vmul.f32 0.01, %v205_v59  ;;  %v554_v1 = vpack.c.bf16 %v285_v61, %v284_v63 }
  0xf9   :  { %vm254_vm9 = vcmp.gt.f32.partialorder %v200_v62, 0.0  ;;  %v270_v2 = vmul.f32 0.01, %v200_v62  ;;  %v486_v3 = vpop.f32.mrb[8].mxu0  ;;  %v376_v48 = vrot.slane %v371_v47, %v375_v46 }
  0xfa   :  { %552 = vmatpush3.bf16.xpose.msra.mxu1 %v551_v56  ;;  %v215_v4 = vadd.f32 %v486_v3, %v735_v33  ;;  %v209_v5 = vpop.f32.mrb[9].mxu0  ;;  %v287_v6 = vsel %vm255_vm8, %v205_v59, %v271_v0 }
  0xfb   :  { %553 = vmatprep.subr.bf16.mxu1 %v605_v29  ;;  %v210_v7 = vadd.f32 %v735_v33, %v209_v5  ;;  %v286_v8 = vsel %vm254_vm9, %v200_v62, %v270_v2 }
  0xfc   :  { %vm257_vm10 = vcmp.gt.f32.partialorder %v215_v4, 0.0  ;;  %v273_v9 = vmul.f32 0.01, %v215_v4  ;;  %v557_v10 = vpack.c.bf16 %v287_v6, %v286_v8 }
  0xfd   :  { %vm256_vm11 = vcmp.gt.f32.partialorder %v210_v7, 0.0  ;;  %v272_v11 = vmul.f32 0.01, %v210_v7  ;;  %v489_v12 = vpop.f32.mrb[10].mxu0 }
  0xfe   :  { %v225_v13 = vadd.f32 %v489_v12, %v735_v33  ;;  %v219_v14 = vpop.f32.mrb[11].mxu0  ;;  %v289_v15 = vsel %vm257_vm10, %v215_v4, %v273_v9 }
  0xff   :  { %v220_v16 = vadd.f32 %v735_v33, %v219_v14  ;;  %v288_v17 = vsel %vm256_vm11, %v210_v7, %v272_v11 }
 0x100   :  { %vm259_vm12 = vcmp.gt.f32.partialorder %v225_v13, 0.0  ;;  %v275_v18 = vmul.f32 0.01, %v225_v13  ;;  %v560_v19 = vpack.c.bf16 %v289_v15, %v288_v17 }
 0x101   :  { %vm258_vm13 = vcmp.gt.f32.partialorder %v220_v16, 0.0  ;;  %v274_v20 = vmul.f32 0.01, %v220_v16  ;;  %v492_v21 = vpop.f32.mrb[12].mxu0 }
 0x102   :  { %555 = vmatpush3.bf16.xpose.msra.mxu1 %v554_v1  ;;  %v235_v22 = vadd.f32 %v492_v21, %v735_v33  ;;  %v229_v23 = vpop.f32.mrb[13].mxu0  ;;  %v291_v24 = vsel %vm259_vm12, %v225_v13, %v275_v18 }
 0x103   :  { %556 = vmatprep.subr.bf16.mxu1 %v605_v29  ;;  %v230_v25 = vadd.f32 %v735_v33, %v229_v23  ;;  %v290_v26 = vsel %vm258_vm13, %v220_v16, %v274_v20 }
 0x104   :  { %vm261_vm14 = vcmp.gt.f32.partialorder %v235_v22, 0.0  ;;  %v277_v27 = vmul.f32 0.01, %v235_v22  ;;  %v563_v28 = vpack.c.bf16 %v291_v24, %v290_v26 }
 0x105   :  { %vm260_vm15 = vcmp.gt.f32.partialorder %v230_v25, 0.0  ;;  %v276_v30 = vmul.f32 0.01, %v230_v25  ;;  %v495_v31 = vpop.f32.mrb[14].mxu0 }
 0x106   :  { %v245_v32 = vadd.f32 %v495_v31, %v735_v33  ;;  %v239_v34 = vpop.f32.mrb[15].mxu0  ;;  %v293_v35 = vsel %vm261_vm14, %v235_v22, %v277_v27 }
 0x107   :  { %v240_v36 = vadd.f32 %v735_v33, %v239_v34  ;;  %v292_v37 = vsel %vm260_vm15, %v230_v25, %v276_v30  ;;  %v296_v33 = vld [vmem:[%s778_s3] sm:$0xff]  ;;  %s581_s3 = scalar_lea.vmem %s391_s17, 16 }
 0x108   :  { %vm263_vm0 = vcmp.gt.f32.partialorder %v245_v32, 0.0  ;;  %v279_v38 = vmul.f32 0.01, %v245_v32  ;;  %v566_v39 = vpack.c.bf16 %v293_v35, %v292_v37  ;;  %p582_p0 = scmp.ne.s32.totalorder %s391_s17, %s581_s3  ;;  %p587_p2 = scmp.lt.s32.totalorder %s585_s18, %s581_s3 }
 0x109   :  { %vm262_vm1 = vcmp.gt.f32.partialorder %v240_v36, 0.0  ;;  %v278_v40 = vmul.f32 0.01, %v240_v36 }
 0x10a   :  { %558 = vmatpush3.bf16.xpose.msra.mxu1 %v557_v10  ;;  %v295_v41 = vsel %vm263_vm0, %v245_v32, %v279_v38  ;;  %p588_p3 = por %p587_p2, %p586_p1 }
 0x10b   :  { %559 = vmatprep.subr.bf16.mxu1 %v605_v29  ;;  %v294_v42 = vsel %vm262_vm1, %v240_v36, %v278_v40 }
 0x10c   :  { %v569_v43 = vpack.c.bf16 %v295_v41, %v294_v42  ;;  %p589_p4 = pnand %p588_p3, %p582_p0 }
 0x112   :  { %561 = vmatpush3.bf16.xpose.msra.mxu1 %v560_v19 }
 0x113   :  { %562 = vmatprep.subr.bf16.mxu1 %v605_v29 }
 0x11a   :  { %564 = vmatpush3.bf16.xpose.msra.mxu1 %v563_v28 }
 0x11b   :  { %565 = vmatprep.subr.bf16.mxu1 %v605_v29 }
 0x122   :  { %567 = vmatpush3.bf16.xpose.msra.mxu1 %v566_v39 }
 0x123   :  { %568 = vmatprep.subr.bf16.mxu1 %v605_v29 }
 0x12a   :  { %570 = vmatpush3.bf16.xpose.msra.mxu1 %v569_v43 }
 0x131   :  { %529 = vmatmul.mubr.f32.vlgmr.msra.gmra.mrb[0].mxu1 %v296_v33 }
 0x204   :  { %v363_v49 = vpop.f32.mrb[0].mxu1 }
 0x205   :  { %v377_v50 = vadd.f32 %v376_v48, %v363_v49  ;;  %v530_v51 = vpop.f32.mrb[1].mxu1 }
 0x207   :  { %v378_v52 = vsub.f32 0.0, %v377_v50 }
 0x209   :  { %v379_v53 = vmul.f32 1.442695, %v378_v52 }
 0x20b   :  { %577 = vpow2.f32 %v379_v53 }
 0x215   :  { %v578_v54 = vpop.eup %577 }
 0x216   :  { %v381_v55 = vadd.f32 1.0, %v578_v54 }
 0x218   :  { %579 = vrcp.f32 %v381_v55 }
 0x222   :  { %v580_v29 = vpop.eup %579 }
 0x223   :  { %383 = vst [vmem:[#allocation3] sm:$0x1] %v580_v29 }
 0x224   :  { %592 = shalt.err (!%p589_p4)
}
 0x225   :  { %s593_s21 = scalar_lea.hbm %s780_s5, 16 }
 0x226   :  { %p594_p5 = scmp.ne.s32.totalorder %s780_s5, %s593_s21  ;;  %p597_p6 = scmp.lt.u32.totalorder %s593_s21, %s780_s5 }
 0x228   :  { %p599_p7 = pnand %p597_p6, %p594_p5 }
 0x22a   :  { %602 = shalt.err (!%p599_p7)
}
 0x22b   :  { %393 = dma.vmem_to_hbm [thread:$0]  %s391_s17, 16, %s780_s5, [#allocation4]  }
 0x22c   :  { %603 = dma.done.wait [#allocation4], 16  }
 0x22d   :  { %604 = vsyncadd [#allocation4], 4294967280 }
 0x22e   :  { %397 = vsyncpa [#allocation4], 1 }

</bundles_post_ra>
